<compile_context>
chip_gen: v7x
topology: tpu7x:2x2x1
jax: 0.10.0
libtpu: 0.0.40
codegen_flags: <defaults>
</compile_context>

<pallas_src>
import math

import jax
import jax.numpy as jnp
from jax.experimental import pallas as pl
from jax.experimental.pallas import tpu as pltpu


def _round_up(n, m):
    return ((n + m - 1) // m) * m


# ---------------------------------------------------------------------------
# Kernel: grid=(T,), state resident in VMEM output blocks across the grid.
# ---------------------------------------------------------------------------
def _mc_lstm_kernel(x_ref, c0_ref, h0_ref, w_ref, c_ref, h_ref):
    t = pl.program_id(0)

    # Initialize the resident state blocks from the supplied initial state.
    @pl.when(t == 0)
    def _init():
        c_ref[...] = c0_ref[...]
        h_ref[...] = h0_ref[...]

    n_pad = h_ref.shape[-1]

    # Fused projection: one MXU matmul of [x | h_prev] against the stacked
    # [Wx; Wh] weight (gates laid out gate-major, n_pad lanes per gate).
    xh = jnp.concatenate([x_ref[...], h_ref[...]], axis=-1)      # [Bp, Kxp+Np]
    pre = jnp.dot(xh, w_ref[...],
                  preferred_element_type=jnp.float32)            # [Bp, 4*Np]

    i_gate = jax.nn.sigmoid(pre[:, 0 * n_pad:1 * n_pad])
    f_gate = jax.nn.sigmoid(pre[:, 1 * n_pad:2 * n_pad])
    g_gate = jnp.tanh(pre[:, 2 * n_pad:3 * n_pad])
    o_gate = jax.nn.sigmoid(pre[:, 3 * n_pad:4 * n_pad])

    c_new = f_gate * c_ref[...] + i_gate * g_gate
    c_ref[...] = c_new
    h_ref[...] = o_gate * jnp.tanh(c_new)


# ---------------------------------------------------------------------------
# Wrapper: runs T timesteps in a single pallas_call.
# ---------------------------------------------------------------------------
@jax.jit
def mc_lstm_op_run(x_seq, c0_pad, h0_pad, w_packed):
    """x_seq: [T, B, iQ, iC, iD]; c0_pad/h0_pad: [Bp, Np]; w_packed: [Kxp+Np, 4*Np].
    Returns final padded (c, h), each [Bp, Np] float32."""
    T, B = x_seq.shape[0], x_seq.shape[1]
    kx = math.prod(x_seq.shape[2:])
    bp, n_pad = c0_pad.shape
    k_total, four_np = w_packed.shape
    kx_pad = k_total - n_pad

    x_flat = x_seq.reshape(T, B, kx).astype(jnp.float32)
    x_pad = jnp.zeros((T, bp, kx_pad), jnp.float32).at[:, :B, :kx].set(x_flat)

    c_out, h_out = pl.pallas_call(
        _mc_lstm_kernel,
        grid=(T,),
        in_specs=[
            pl.BlockSpec((None, bp, kx_pad), lambda t: (t, 0, 0)),  # x[t]
            pl.BlockSpec((bp, n_pad), lambda t: (0, 0)),            # c0 (resident)
            pl.BlockSpec((bp, n_pad), lambda t: (0, 0)),            # h0 (resident)
            pl.BlockSpec((k_total, four_np), lambda t: (0, 0)),     # W  (resident)
        ],
        out_specs=(
            pl.BlockSpec((bp, n_pad), lambda t: (0, 0)),            # c (carried)
            pl.BlockSpec((bp, n_pad), lambda t: (0, 0)),            # h (carried)
        ),
        out_shape=(
            jax.ShapeDtypeStruct((bp, n_pad), jnp.float32),
            jax.ShapeDtypeStruct((bp, n_pad), jnp.float32),
        ),
        compiler_params=pltpu.CompilerParams(
            dimension_semantics=("arbitrary",)),   # time is sequential
    )(x_pad, c0_pad, h0_pad, w_packed)
    return c_out, h_out


def pack_mc_lstm_weights(xOps, hOps, kx_pad, n_pad):
    """xOps: [4, oQ, iQ, oC, iC, oD, iD]; hOps: [4, oQ, oQ, oC, oC, oD, oD].
    Returns fused, padded weight [kx_pad + n_pad, 4*n_pad]: rows = flattened
    (iQ,iC,iD) for x followed (at offset kx_pad) by flattened (oQ,oC,oD) for
    h_p; columns = gate-major, n_pad lanes per gate, first N real."""
    _, oQ, iQ, oC, iC, oD, iD = xOps.shape
    kx = iQ * iC * iD
    n = oQ * oC * oD
    wx = jnp.transpose(xOps, (2, 4, 6, 0, 1, 3, 5)).reshape(kx, 4, n)
    wh = jnp.transpose(hOps, (2, 4, 6, 0, 1, 3, 5)).reshape(n, 4, n)
    w = jnp.zeros((kx_pad + n_pad, 4, n_pad), jnp.float32)
    w = w.at[:kx, :, :n].set(wx.astype(jnp.float32))
    w = w.at[kx_pad:kx_pad + n, :, :n].set(wh.astype(jnp.float32))
    return w.reshape(kx_pad + n_pad, 4 * n_pad)


# ---------------------------------------------------------------------------
# JAX mirror of the PyTorch MC_LSTM_Op module (forward only).
# ---------------------------------------------------------------------------
class MCLSTMOp:
    def __init__(self, batch_size, input_currencies, input_channels, input_dim,
                 output_currencies, output_channels, output_dim, key):
        self.batch_size = batch_size
        self.input_currencies = input_currencies
        self.input_channels = input_channels
        self.input_dim = input_dim
        self.output_currencies = output_currencies
        self.output_channels = output_channels
        self.output_dim = output_dim

        self.state_size = (batch_size * input_currencies * input_channels *
                           output_currencies * output_channels * output_dim)
        # NOTE: the reference module assigns these twice; the *final* values are:
        self.xOp_state_size = self.state_size * output_dim
        self.hOp_state_size = self.state_size * input_dim

        k_x, k_h = jax.random.split(key)
        self.xOps = (jax.random.normal(
            k_x, (4, output_currencies, input_currencies, output_channels,
                  input_channels, output_dim, input_dim), jnp.float32)
            / math.sqrt(self.xOp_state_size))
        self.hOps = (jax.random.normal(
            k_h, (4, output_currencies, output_currencies, output_channels,
                  output_channels, output_dim, output_dim), jnp.float32)
            / math.sqrt(self.hOp_state_size))

        self.N = output_currencies * output_channels * output_dim
        self.Kx = input_currencies * input_channels * input_dim
        self.Bp = _round_up(batch_size, 8)
        self.Np = _round_up(self.N, 128)
        self.Kxp = _round_up(self.Kx, 128)

        # Weight packing done once (not per call).
        self.w_packed = pack_mc_lstm_weights(self.xOps, self.hOps,
                                             self.Kxp, self.Np)

        c0 = jnp.zeros((batch_size, output_currencies, output_channels,
                        output_dim), jnp.float32)
        h0 = (jnp.full((batch_size, output_currencies, output_channels,
                        output_dim), 1.0, jnp.float32)
              / (batch_size * output_currencies * output_channels * output_dim))
        self._c_pad = self._pad_state(c0)
        self._h_pad = self._pad_state(h0)

    # --- padded <-> logical state views ---
    def _pad_state(self, s):
        s = s.reshape(self.batch_size, self.N).astype(jnp.float32)
        return (jnp.zeros((self.Bp, self.Np), jnp.float32)
                .at[:self.batch_size, :self.N].set(s))

    def _unpad_state(self, s_pad):
        return s_pad[:self.batch_size, :self.N].reshape(
            self.batch_size, self.output_currencies, self.output_channels,
            self.output_dim)

    @property
    def c(self):
        return self._unpad_state(self._c_pad)

    @property
    def h(self):
        return self._unpad_state(self._h_pad)

    def load_states(self, c, h):
        self._c_pad = self._pad_state(c)
        self._h_pad = self._pad_state(h)

    def __call__(self, x):
        """x: [B, iQ, iC, iD] -> h: [B, oQ, oC, oD] (one recurrent step)."""
        c_pad, h_pad = mc_lstm_op_run(x[None], self._c_pad, self._h_pad,
                                      self.w_packed)
        self._c_pad, self._h_pad = c_pad, h_pad
        return self._unpad_state(h_pad)

    def run_sequence(self, x_seq):
        """x_seq: [T, B, iQ, iC, iD]; runs all T steps in one pallas_call
        (time loop on the grid, state resident in VMEM). Returns final h."""
        c_pad, h_pad = mc_lstm_op_run(x_seq, self._c_pad, self._h_pad,
                                      self.w_packed)
        self._c_pad, self._h_pad = c_pad, h_pad
        return self._unpad_state(h_pad)


# ---------------------------------------------------------------------------
# Pure-JAX reference (same math as the assumed C++ op).
# ---------------------------------------------------------------------------
def _reference_forward(x, c_p, h_p, xOps, hOps):
    pre = (jnp.einsum('buvw,gpuqvrw->bgpqr', x, xOps)
           + jnp.einsum('bxyz,gpxqyrz->bgpqr', h_p, hOps))   # [B,4,oQ,oC,oD]
    i = jax.nn.sigmoid(pre[:, 0])
    f = jax.nn.sigmoid(pre[:, 1])
    g = jnp.tanh(pre[:, 2])
    o = jax.nn.sigmoid(pre[:, 3])
    c = f * c_p + i * g
    return c, o * jnp.tanh(c)


if __name__ == "__main__":
    key = jax.random.PRNGKey(0)
    k_mod, k_in = jax.random.split(key)

    B, iQ, iC, iD = 2, 2, 3, 8          # batch, input currencies/channels/dim
    oQ, oC, oD = 2, 3, 4                # output currencies/channels/dim
    T = 3                               # recurrent steps for the test

    mod = MCLSTMOp(B, iQ, iC, iD, oQ, oC, oD, k_mod)
    x_seq = jax.random.normal(k_in, (T, B, iQ, iC, iD), jnp.float32)

    # Pure-JAX reference recurrence.
    c_ref, h_ref = mod.c, mod.h
    for t in range(T):
        c_ref, h_ref = _reference_forward(x_seq[t], c_ref, h_ref,
                                          mod.xOps, mod.hOps)

    # (a) Module-style per-step calls (kernel with T=1 grid each call).
    c0_pad, h0_pad = mod._c_pad, mod._h_pad
    h = None
    for t in range(T):
        h = mod(x_seq[t])
    jax.block_until_ready(h)
    assert jnp.allclose(h, h_ref, atol=1e-5, rtol=1e-4)
    assert jnp.allclose(mod.c, c_ref, atol=1e-5, rtol=1e-4)

    # (b) Whole sequence in a single pallas_call (grid over time, VMEM state).
    c_pad_seq, h_pad_seq = mc_lstm_op_run(x_seq, c0_pad, h0_pad, mod.w_packed)
    jax.block_until_ready((c_pad_seq, h_pad_seq))
    assert jnp.allclose(h_pad_seq[:B, :mod.N].reshape(h_ref.shape), h_ref,
                        atol=1e-5, rtol=1e-4)
    assert jnp.allclose(c_pad_seq[:B, :mod.N].reshape(c_ref.shape), c_ref,
                        atol=1e-5, rtol=1e-4)

    print("KERNEL_OK")
</pallas_src>

<mosaic_0001>
module attributes {stable_mosaic.version = 11 : i64} {
  func.func @_mc_lstm_kernel(%arg0: i32, %arg1: memref<1x8x128xf32, #tpu.memory_space<vmem>>, %arg2: memref<8x128xf32, #tpu.memory_space<vmem>>, %arg3: memref<8x128xf32, #tpu.memory_space<vmem>>, %arg4: memref<256x512xf32, #tpu.memory_space<vmem>>, %arg5: memref<8x128xf32, #tpu.memory_space<vmem>>, %arg6: memref<8x128xf32, #tpu.memory_space<vmem>>) attributes {dimension_semantics = [#tpu.dimension_semantics<arbitrary>], iteration_bounds = array<i64: 1>, scalar_prefetch = 0 : i64, scratch_operands = 0 : i64, tpu.core_type = #tpu.core_type<tc>, window_params = [{transform_indices = @transform_0, window_bounds = array<i64: 1, 8, 128>}, {pipeline_mode = #tpu.pipeline_mode<synchronous>, transform_indices = @transform_1, window_bounds = array<i64: 8, 128>}, {pipeline_mode = #tpu.pipeline_mode<synchronous>, transform_indices = @transform_2, window_bounds = array<i64: 8, 128>}, {pipeline_mode = #tpu.pipeline_mode<synchronous>, transform_indices = @transform_3, window_bounds = array<i64: 256, 512>}, {pipeline_mode = #tpu.pipeline_mode<synchronous>, transform_indices = @transform_4, window_bounds = array<i64: 8, 128>}, {pipeline_mode = #tpu.pipeline_mode<synchronous>, transform_indices = @transform_5, window_bounds = array<i64: 8, 128>}]} {
    %c0_i32 = arith.constant 0 : i32
    %0 = arith.cmpi eq, %arg0, %c0_i32 : i32
    %1 = arith.extui %0 : i1 to i32
    %c0_i32_0 = arith.constant 0 : i32
    %2 = arith.cmpi ne, %1, %c0_i32_0 : i32
    scf.if %2 {
      %c0_16 = arith.constant 0 : index
      %c0_17 = arith.constant 0 : index
      %37 = vector.load %arg2[%c0_16, %c0_17] : memref<8x128xf32, #tpu.memory_space<vmem>>, vector<8x128xf32>
      %c0_18 = arith.constant 0 : index
      %c0_19 = arith.constant 0 : index
      %38 = vector.load %arg5[%c0_18, %c0_19] : memref<8x128xf32, #tpu.memory_space<vmem>>, vector<8x128xf32>
      tpu.vector_store %arg5[%c0_18, %c0_19], %37 {strides = array<i32>} : memref<8x128xf32, #tpu.memory_space<vmem>>, vector<8x128xf32>,
      %c0_20 = arith.constant 0 : index
      %c0_21 = arith.constant 0 : index
      %39 = vector.load %arg3[%c0_20, %c0_21] : memref<8x128xf32, #tpu.memory_space<vmem>>, vector<8x128xf32>
      %c0_22 = arith.constant 0 : index
      %c0_23 = arith.constant 0 : index
      %40 = vector.load %arg6[%c0_22, %c0_23] : memref<8x128xf32, #tpu.memory_space<vmem>>, vector<8x128xf32>
      tpu.vector_store %arg6[%c0_22, %c0_23], %39 {strides = array<i32>} : memref<8x128xf32, #tpu.memory_space<vmem>>, vector<8x128xf32>,
    } else {
    }
    %c0 = arith.constant 0 : index
    %c0_1 = arith.constant 0 : index
    %c0_2 = arith.constant 0 : index
    %3 = vector.load %arg1[%c0, %c0_1, %c0_2] : memref<1x8x128xf32, #tpu.memory_space<vmem>>, vector<1x8x128xf32>
    %4 = vector.shape_cast %3 : vector<1x8x128xf32> to vector<8x128xf32>
    %c0_3 = arith.constant 0 : index
    %c0_4 = arith.constant 0 : index
    %5 = vector.load %arg6[%c0_3, %c0_4] : memref<8x128xf32, #tpu.memory_space<vmem>>, vector<8x128xf32>
    %6 = tpu.concatenate %4, %5 in 1 : vector<8x128xf32>, vector<8x128xf32> -> vector<8x256xf32>
    %c0_5 = arith.constant 0 : index
    %c0_6 = arith.constant 0 : index
    %7 = vector.load %arg4[%c0_5, %c0_6] : memref<256x512xf32, #tpu.memory_space<vmem>>, vector<256x512xf32>
    %cst = arith.constant dense<0.000000e+00> : vector<8x512xf32>
    %8 = tpu.matmul %6, %7, %cst {dimension_numbers = #tpu.dot_dimension_numbers<[1], [0], [0], [1], [0, 0, 1, 1], [], []>} : vector<8x256xf32>, vector<256x512xf32>, vector<8x512xf32> -> vector<8x512xf32>
    %9 = vector.extract_strided_slice %8 {offsets = [0, 0], sizes = [8, 128], strides = [1, 1]} : vector<8x512xf32> to vector<8x128xf32>
    %10 = arith.negf %9 : vector<8x128xf32>
    %11 = math.exp %10 : vector<8x128xf32>
    %cst_7 = arith.constant 1.000000e+00 : f32
    %12 = vector.broadcast %cst_7 : f32 to vector<8x128xf32>
    %13 = arith.addf %12, %11 : vector<8x128xf32>
    %14 = arith.divf %12, %13 : vector<8x128xf32>
    %15 = vector.extract_strided_slice %8 {offsets = [0, 128], sizes = [8, 128], strides = [1, 1]} : vector<8x512xf32> to vector<8x128xf32>
    %16 = arith.negf %15 : vector<8x128xf32>
    %17 = math.exp %16 : vector<8x128xf32>
    %cst_8 = arith.constant 1.000000e+00 : f32
    %18 = vector.broadcast %cst_8 : f32 to vector<8x128xf32>
    %19 = arith.addf %18, %17 : vector<8x128xf32>
    %20 = arith.divf %18, %19 : vector<8x128xf32>
    %21 = vector.extract_strided_slice %8 {offsets = [0, 256], sizes = [8, 128], strides = [1, 1]} : vector<8x512xf32> to vector<8x128xf32>
    %22 = math.tanh %21 : vector<8x128xf32>
    %23 = vector.extract_strided_slice %8 {offsets = [0, 384], sizes = [8, 128], strides = [1, 1]} : vector<8x512xf32> to vector<8x128xf32>
    %24 = arith.negf %23 : vector<8x128xf32>
    %25 = math.exp %24 : vector<8x128xf32>
    %cst_9 = arith.constant 1.000000e+00 : f32
    %26 = vector.broadcast %cst_9 : f32 to vector<8x128xf32>
    %27 = arith.addf %26, %25 : vector<8x128xf32>
    %28 = arith.divf %26, %27 : vector<8x128xf32>
    %c0_10 = arith.constant 0 : index
    %c0_11 = arith.constant 0 : index
    %29 = vector.load %arg5[%c0_10, %c0_11] : memref<8x128xf32, #tpu.memory_space<vmem>>, vector<8x128xf32>
    %30 = arith.mulf %20, %29 : vector<8x128xf32>
    %31 = arith.mulf %14, %22 : vector<8x128xf32>
    %32 = arith.addf %30, %31 : vector<8x128xf32>
    %c0_12 = arith.constant 0 : index
    %c0_13 = arith.constant 0 : index
    %33 = vector.load %arg5[%c0_12, %c0_13] : memref<8x128xf32, #tpu.memory_space<vmem>>, vector<8x128xf32>
    tpu.vector_store %arg5[%c0_12, %c0_13], %32 {strides = array<i32>} : memref<8x128xf32, #tpu.memory_space<vmem>>, vector<8x128xf32>,
    %34 = math.tanh %32 : vector<8x128xf32>
    %35 = arith.mulf %28, %34 : vector<8x128xf32>
    %c0_14 = arith.constant 0 : index
    %c0_15 = arith.constant 0 : index
    %36 = vector.load %arg6[%c0_14, %c0_15] : memref<8x128xf32, #tpu.memory_space<vmem>>, vector<8x128xf32>
    tpu.vector_store %arg6[%c0_14, %c0_15], %35 {strides = array<i32>} : memref<8x128xf32, #tpu.memory_space<vmem>>, vector<8x128xf32>,
    return
  }
  func.func @transform_0(%arg0: i32) -> (i32, i32, i32) {
    %c0_i32 = arith.constant 0 : i32
    %c0_i32_0 = arith.constant 0 : i32
    %c0_i32_1 = arith.constant 0 : i32
    return %arg0, %c0_i32, %c0_i32_0 : i32, i32, i32
  }
  func.func @transform_1(%arg0: i32) -> (i32, i32) {
    %c0_i32 = arith.constant 0 : i32
    %c0_i32_0 = arith.constant 0 : i32
    %c0_i32_1 = arith.constant 0 : i32
    return %c0_i32, %c0_i32_0 : i32, i32
  }
  func.func @transform_2(%arg0: i32) -> (i32, i32) {
    %c0_i32 = arith.constant 0 : i32
    %c0_i32_0 = arith.constant 0 : i32
    %c0_i32_1 = arith.constant 0 : i32
    return %c0_i32, %c0_i32_0 : i32, i32
  }
  func.func @transform_3(%arg0: i32) -> (i32, i32) {
    %c0_i32 = arith.constant 0 : i32
    %c0_i32_0 = arith.constant 0 : i32
    %c0_i32_1 = arith.constant 0 : i32
    return %c0_i32, %c0_i32_0 : i32, i32
  }
  func.func @transform_4(%arg0: i32) -> (i32, i32) {
    %c0_i32 = arith.constant 0 : i32
    %c0_i32_0 = arith.constant 0 : i32
    %c0_i32_1 = arith.constant 0 : i32
    return %c0_i32, %c0_i32_0 : i32, i32
  }
  func.func @transform_5(%arg0: i32) -> (i32, i32) {
    %c0_i32 = arith.constant 0 : i32
    %c0_i32_0 = arith.constant 0 : i32
    %c0_i32_1 = arith.constant 0 : i32
    return %c0_i32, %c0_i32_0 : i32, i32
  }
}

</mosaic_0001>

<bundles_post_ra>
// kernel: mc_lstm_op_run.1
= control target key start
LH: loop header
LB: loop body
LE: loop exit
PB: predicated region body
PF: predicated region fallthrough
CT: control target
= control target key end

     0   :  { %11 = vsyncpa [#allocation3], 0  ;;  %s675_s0 = inlined_call_operand.vmem [shape: f32[1,8,128], index: 0, kind: input, shape index: {}]   ;;  %s676_s1 = inlined_call_operand.vmem [shape: f32[8,128], index: 1, kind: input, shape index: {}]   ;;  %s677_s2 = inlined_call_operand.vmem [shape: f32[8,128], index: 2, kind: input, shape index: {}]   ;;  %s678_s3 = inlined_call_operand.hbm [shape: f32[256,512], index: 3, kind: input, shape index: {}]   ;;  %s679_s4 = inlined_call_operand.hbm [shape: f32[8,128], index: 4, kind: output, shape index: {0}]   ;;  %s680_s5 = inlined_call_operand.hbm [shape: f32[8,128], index: 5, kind: output, shape index: {1}]  }
   0x1   :  { %12 = vsyncpa [#allocation4], 0 }
   0x2   :  { %13 = vsyncpa [#allocation7], 0  ;;  %s595_s18 = smov [#allocation2]   ;;  %s523_s22 = scalar_lea.hbm %s678_s3, 16384 }
   0x3   :  { %s25_s19 = sshll.u32 %s595_s18, 4  ;;  %p524_p0 = scmp.ne.s32.totalorder %s678_s3, %s523_s22  ;;  %s26_s19 = int_to_ptr.vmem [resolvable:$true] %s25_s19 }
   0x4   :  { %p527_p1 = scmp.lt.u32.totalorder %s523_s22, %s678_s3 }
   0x6   :  { %p529_p2 = pnand %p527_p1, %p524_p0 }
   0x8   :  { %532 = shalt.err (!%p529_p2)
}
   0x9   :  { %s533_s27 = scalar_lea.vmem %s26_s19, 16384  ;;  %p538_p4 = scmp.lt.s32.totalorder %s26_s19, %s26_s19 }
   0xa   :  { %p534_p3 = scmp.ne.s32.totalorder %s26_s19, %s533_s27  ;;  %p539_p5 = scmp.lt.s32.totalorder %s533_s27, %s533_s27 }
   0xc   :  { %p540_p6 = por %p539_p5, %p538_p4 }
   0xe   :  { %p541_p7 = pnand %p540_p6, %p534_p3 }
  0x10   :  { %544 = shalt.err (!%p541_p7)
}
  0x11   :  { %s596_s28 = smov 512   ;;  %s597_s29 = smov 32  }
  0x12   :  { %31 = dma.hbm_to_vmem [thread:$0]  %s678_s3, 16384, %s26_s19, [#allocation3], %s596_s28, %s596_s28, %s597_s29  }
  0x13   :  { %589 = dma.done.wait [#allocation3], 16384  }
  0x14   :  { %590 = vsyncadd [#allocation3], 4294950912  ;;  %v46_v0 = vld [vmem:[#allocation2 + $0x8] sm:$0xff]  ;;  %v45_v2 = vld [vmem:[#allocation2] sm:$0xff]  ;;  %s598_s10 = smov [#allocation5]  }
  0x15   :  { %v50_v1 = vld [vmem:[#allocation2 + $0x28] sm:$0xff]  ;;  %v49_v4 = vld [vmem:[#allocation2 + $0x20] sm:$0xff]  ;;  %v48_v18 = vld [vmem:[#allocation2 + $0x18] sm:$0xff]  ;;  %s348_s11 = sshll.u32 %s598_s10, 4  ;;  %s349_s11 = int_to_ptr.vmem [resolvable:$true] %s348_s11 }
  0x16   :  { %v374_v3 = vpack.c.bf16 %v50_v1, %v46_v0  ;;  %v54_v5 = vld [vmem:[#allocation2 + $0x48] sm:$0xff]  ;;  %v376_v7 = vpack.c.bf16 %v49_v4, %v45_v2  ;;  %v53_v9 = vld [vmem:[#allocation2 + $0x40] sm:$0xff]  ;;  %v52_v19 = vld [vmem:[#allocation2 + $0x38] sm:$0xff]  ;;  %s545_s12 = scalar_lea.vmem %s349_s11, 128  ;;  %p550_p9 = scmp.lt.s32.totalorder %s349_s11, %s349_s11 }
  0x17   :  { %v58_v6 = vld [vmem:[#allocation2 + $0x68] sm:$0xff]  ;;  %v57_v10 = vld [vmem:[#allocation2 + $0x60] sm:$0xff]  ;;  %v438_v21 = vpack.c.bf16 %v52_v19, %v48_v18  ;;  %v47_v22 = vld [vmem:[#allocation2 + $0x10] sm:$0xff]  ;;  %p546_p8 = scmp.ne.s32.totalorder %s349_s11, %s545_s12  ;;  %p551_p10 = scmp.lt.s32.totalorder %s545_s12, %s545_s12 }
  0x18   :  { %v378_v8 = vpack.c.bf16 %v58_v6, %v54_v5  ;;  %v62_v11 = vld [vmem:[#allocation2 + $0x88] sm:$0xff]  ;;  %375 = vmatprep.subr.bf16.mxu0 %v374_v3  ;;  %v380_v13 = vpack.c.bf16 %v57_v10, %v53_v9  ;;  %v61_v14 = vld [vmem:[#allocation2 + $0x80] sm:$0xff]  ;;  %v51_v23 = vld [vmem:[#allocation2 + $0x30] sm:$0xff] }
  0x19   :  { %v66_v12 = vld [vmem:[#allocation2 + $0xa8] sm:$0xff]  ;;  %377 = vmatpush1.bf16.msra.mxu0 %v376_v7  ;;  %v65_v15 = vld [vmem:[#allocation2 + $0xa0] sm:$0xff]  ;;  %v440_v24 = vpack.c.bf16 %v51_v23, %v47_v22  ;;  %439 = vmatprep.subr.bf16.mxu1 %v438_v21  ;;  %v56_v26 = vld [vmem:[#allocation2 + $0x58] sm:$0xff]  ;;  %p552_p11 = por %p551_p10, %p550_p9 }
  0x1a   :  { %379 = vmatprep.subr.bf16.mxu0 %v378_v8  ;;  %v382_v16 = vpack.c.bf16 %v66_v12, %v62_v11  ;;  %v70_v17 = vld [vmem:[#allocation2 + $0xc8] sm:$0xff]  ;;  %v384_v25 = vpack.c.bf16 %v65_v15, %v61_v14  ;;  %v60_v27 = vld [vmem:[#allocation2 + $0x78] sm:$0xff]  ;;  %v55_v28 = vld [vmem:[#allocation2 + $0x50] sm:$0xff] }
  0x1b   :  { %v74_v20 = vld [vmem:[#allocation2 + $0xe8] sm:$0xff]  ;;  %v69_v30 = vld [vmem:[#allocation2 + $0xc0] sm:$0xff]  ;;  %441 = vmatpush1.bf16.msra.mxu1 %v440_v24  ;;  %v442_v32 = vpack.c.bf16 %v60_v27, %v56_v26  ;;  %v59_v33 = vld [vmem:[#allocation2 + $0x70] sm:$0xff]  ;;  %p553_p12 = pnand %p552_p11, %p546_p8 }
  0x1c   :  { %v386_v29 = vpack.c.bf16 %v74_v20, %v70_v17  ;;  %v73_v31 = vld [vmem:[#allocation2 + $0xe0] sm:$0xff]  ;;  %v78_v34 = vld [vmem:[#allocation2 + $0x108] sm:$0xff]  ;;  %v444_v36 = vpack.c.bf16 %v59_v33, %v55_v28  ;;  %v64_v37 = vld [vmem:[#allocation2 + $0x98] sm:$0xff] }
  0x1d   :  { %381 = vmatpush1.bf16.msra.mxu0 %v380_v13  ;;  %v82_v35 = vld [vmem:[#allocation2 + $0x128] sm:$0xff]  ;;  %443 = vmatprep.subr.bf16.mxu1 %v442_v32  ;;  %v68_v38 = vld [vmem:[#allocation2 + $0xb8] sm:$0xff]  ;;  %v63_v39 = vld [vmem:[#allocation2 + $0x90] sm:$0xff]  ;;  %v388_v41 = vpack.c.bf16 %v73_v31, %v69_v30 }
  0x1e   :  { %383 = vmatprep.subr.bf16.mxu0 %v382_v16  ;;  %v67_v40 = vld [vmem:[#allocation2 + $0xb0] sm:$0xff]  ;;  %v77_v42 = vld [vmem:[#allocation2 + $0x100] sm:$0xff]  ;;  %v446_v44 = vpack.c.bf16 %v68_v38, %v64_v37  ;;  %v390_v45 = vpack.c.bf16 %v82_v35, %v78_v34  ;;  %v86_v46 = vld [vmem:[#allocation2 + $0x148] sm:$0xff] }
  0x1f   :  { %v81_v43 = vld [vmem:[#allocation2 + $0x120] sm:$0xff]  ;;  %445 = vmatpush1.bf16.msra.mxu1 %v444_v36  ;;  %v448_v47 = vpack.c.bf16 %v67_v40, %v63_v39  ;;  %v72_v48 = vld [vmem:[#allocation2 + $0xd8] sm:$0xff]  ;;  %v90_v50 = vld [vmem:[#allocation2 + $0x168] sm:$0xff] }
  0x20   :  { %v76_v49 = vld [vmem:[#allocation2 + $0xf8] sm:$0xff]  ;;  %447 = vmatprep.subr.bf16.mxu1 %v446_v44  ;;  %v71_v52 = vld [vmem:[#allocation2 + $0xd0] sm:$0xff]  ;;  %v392_v54 = vpack.c.bf16 %v81_v43, %v77_v42  ;;  %v394_v57 = vpack.c.bf16 %v90_v50, %v86_v46  ;;  %v85_v58 = vld [vmem:[#allocation2 + $0x140] sm:$0xff] }
  0x21   :  { %385 = vmatpush1.bf16.msra.mxu0 %v384_v25  ;;  %v450_v51 = vpack.c.bf16 %v76_v49, %v72_v48  ;;  %v75_v53 = vld [vmem:[#allocation2 + $0xf0] sm:$0xff]  ;;  %v80_v55 = vld [vmem:[#allocation2 + $0x118] sm:$0xff]  ;;  %v89_v59 = vld [vmem:[#allocation2 + $0x160] sm:$0xff] }
  0x22   :  { %387 = vmatprep.subr.bf16.mxu0 %v386_v29  ;;  %v84_v56 = vld [vmem:[#allocation2 + $0x138] sm:$0xff]  ;;  %v94_v60 = vld [vmem:[#allocation2 + $0x188] sm:$0xff]  ;;  %v452_v61 = vpack.c.bf16 %v75_v53, %v71_v52  ;;  %v79_v0 = vld [vmem:[#allocation2 + $0x110] sm:$0xff]  ;;  %v396_v4 = vpack.c.bf16 %v89_v59, %v85_v58 }
  0x23   :  { %449 = vmatpush1.bf16.msra.mxu1 %v448_v47  ;;  %v98_v62 = vld [vmem:[#allocation2 + $0x1a8] sm:$0xff]  ;;  %v454_v63 = vpack.c.bf16 %v84_v56, %v80_v55  ;;  %v83_v1 = vld [vmem:[#allocation2 + $0x130] sm:$0xff]  ;;  %v88_v2 = vld [vmem:[#allocation2 + $0x158] sm:$0xff] }
  0x24   :  { %451 = vmatprep.subr.bf16.mxu1 %v450_v51  ;;  %v92_v3 = vld [vmem:[#allocation2 + $0x178] sm:$0xff]  ;;  %v398_v5 = vpack.c.bf16 %v98_v62, %v94_v60  ;;  %v93_v6 = vld [vmem:[#allocation2 + $0x180] sm:$0xff]  ;;  %v102_v8 = vld [vmem:[#allocation2 + $0x1c8] sm:$0xff]  ;;  %v456_v9 = vpack.c.bf16 %v83_v1, %v79_v0 }
  0x25   :  { %389 = vmatpush1.bf16.msra.mxu0 %v388_v41  ;;  %v97_v7 = vld [vmem:[#allocation2 + $0x1a0] sm:$0xff]  ;;  %v106_v10 = vld [vmem:[#allocation2 + $0x1e8] sm:$0xff]  ;;  %v458_v11 = vpack.c.bf16 %v92_v3, %v88_v2  ;;  %v87_v12 = vld [vmem:[#allocation2 + $0x150] sm:$0xff] }
  0x26   :  { %391 = vmatprep.subr.bf16.mxu0 %v390_v45  ;;  %v91_v13 = vld [vmem:[#allocation2 + $0x170] sm:$0xff]  ;;  %v96_v14 = vld [vmem:[#allocation2 + $0x198] sm:$0xff]  ;;  %v400_v16 = vpack.c.bf16 %v97_v7, %v93_v6  ;;  %v402_v17 = vpack.c.bf16 %v106_v10, %v102_v8  ;;  %v101_v18 = vld [vmem:[#allocation2 + $0x1c0] sm:$0xff] }
  0x27   :  { %453 = vmatpush1.bf16.msra.mxu1 %v452_v61  ;;  %v100_v15 = vld [vmem:[#allocation2 + $0x1b8] sm:$0xff]  ;;  %v105_v19 = vld [vmem:[#allocation2 + $0x1e0] sm:$0xff]  ;;  %v110_v20 = vld [vmem:[#allocation2 + $0x208] sm:$0xff]  ;;  %v460_v21 = vpack.c.bf16 %v91_v13, %v87_v12 }
  0x28   :  { %455 = vmatprep.subr.bf16.mxu1 %v454_v63  ;;  %v114_v22 = vld [vmem:[#allocation2 + $0x228] sm:$0xff]  ;;  %v462_v23 = vpack.c.bf16 %v100_v15, %v96_v14  ;;  %v95_v24 = vld [vmem:[#allocation2 + $0x190] sm:$0xff]  ;;  %v104_v26 = vld [vmem:[#allocation2 + $0x1d8] sm:$0xff]  ;;  %v404_v28 = vpack.c.bf16 %v105_v19, %v101_v18 }
  0x29   :  { %393 = vmatpush1.bf16.msra.mxu0 %v392_v54  ;;  %v99_v25 = vld [vmem:[#allocation2 + $0x1b0] sm:$0xff]  ;;  %v108_v27 = vld [vmem:[#allocation2 + $0x1f8] sm:$0xff]  ;;  %v406_v29 = vpack.c.bf16 %v114_v22, %v110_v20  ;;  %v109_v30 = vld [vmem:[#allocation2 + $0x200] sm:$0xff] }
  0x2a   :  { %395 = vmatprep.subr.bf16.mxu0 %v394_v57  ;;  %v113_v31 = vld [vmem:[#allocation2 + $0x220] sm:$0xff]  ;;  %v118_v32 = vld [vmem:[#allocation2 + $0x248] sm:$0xff]  ;;  %v464_v33 = vpack.c.bf16 %v99_v25, %v95_v24  ;;  %v466_v35 = vpack.c.bf16 %v108_v27, %v104_v26  ;;  %v103_v36 = vld [vmem:[#allocation2 + $0x1d0] sm:$0xff] }
  0x2b   :  { %457 = vmatpush1.bf16.msra.mxu1 %v456_v9  ;;  %v122_v34 = vld [vmem:[#allocation2 + $0x268] sm:$0xff]  ;;  %v107_v37 = vld [vmem:[#allocation2 + $0x1f0] sm:$0xff]  ;;  %v112_v38 = vld [vmem:[#allocation2 + $0x218] sm:$0xff]  ;;  %v408_v40 = vpack.c.bf16 %v113_v31, %v109_v30 }
  0x2c   :  { %459 = vmatprep.subr.bf16.mxu1 %v458_v11  ;;  %v116_v39 = vld [vmem:[#allocation2 + $0x238] sm:$0xff]  ;;  %v410_v41 = vpack.c.bf16 %v122_v34, %v118_v32  ;;  %v117_v42 = vld [vmem:[#allocation2 + $0x240] sm:$0xff]  ;;  %v126_v44 = vld [vmem:[#allocation2 + $0x288] sm:$0xff]  ;;  %v468_v45 = vpack.c.bf16 %v107_v37, %v103_v36 }
  0x2d   :  { %397 = vmatpush1.bf16.msra.mxu0 %v396_v4  ;;  %v121_v43 = vld [vmem:[#allocation2 + $0x260] sm:$0xff]  ;;  %v130_v46 = vld [vmem:[#allocation2 + $0x2a8] sm:$0xff]  ;;  %v470_v47 = vpack.c.bf16 %v116_v39, %v112_v38  ;;  %v111_v48 = vld [vmem:[#allocation2 + $0x210] sm:$0xff] }
  0x2e   :  { %399 = vmatprep.subr.bf16.mxu0 %v398_v5  ;;  %v115_v49 = vld [vmem:[#allocation2 + $0x230] sm:$0xff]  ;;  %v120_v50 = vld [vmem:[#allocation2 + $0x258] sm:$0xff]  ;;  %v412_v52 = vpack.c.bf16 %v121_v43, %v117_v42  ;;  %v125_v53 = vld [vmem:[#allocation2 + $0x280] sm:$0xff]  ;;  %v414_v54 = vpack.c.bf16 %v130_v46, %v126_v44 }
  0x2f   :  { %461 = vmatpush1.bf16.msra.mxu1 %v460_v21  ;;  %v124_v51 = vld [vmem:[#allocation2 + $0x278] sm:$0xff]  ;;  %v129_v55 = vld [vmem:[#allocation2 + $0x2a0] sm:$0xff]  ;;  %v134_v56 = vld [vmem:[#allocation2 + $0x2c8] sm:$0xff]  ;;  %v472_v58 = vpack.c.bf16 %v115_v49, %v111_v48 }
  0x30   :  { %463 = vmatprep.subr.bf16.mxu1 %v462_v23  ;;  %v138_v57 = vld [vmem:[#allocation2 + $0x2e8] sm:$0xff]  ;;  %v474_v59 = vpack.c.bf16 %v124_v51, %v120_v50  ;;  %v119_v60 = vld [vmem:[#allocation2 + $0x250] sm:$0xff]  ;;  %v41_v62 = vld [vmem:[%s677_s2] sm:$0xff]  ;;  %v416_v1 = vpack.c.bf16 %v129_v55, %v125_v53 }
  0x31   :  { %401 = vmatpush1.bf16.msra.mxu0 %v400_v16  ;;  %v123_v61 = vld [vmem:[#allocation2 + $0x270] sm:$0xff]  ;;  %v128_v63 = vld [vmem:[#allocation2 + $0x298] sm:$0xff]  ;;  %237 = vmatprep.mubr.f32.mxu0 %v41_v62  ;;  %v418_v2 = vpack.c.bf16 %v138_v57, %v134_v56  ;;  %v133_v3 = vld [vmem:[#allocation2 + $0x2c0] sm:$0xff] }
  0x32   :  { %403 = vmatprep.subr.bf16.mxu0 %v402_v17  ;;  %v132_v0 = vld [vmem:[#allocation2 + $0x2b8] sm:$0xff]  ;;  %308 = vmatprep.mubr.f32.mxu1 %v41_v62  ;;  %v137_v4 = vld [vmem:[#allocation2 + $0x2e0] sm:$0xff]  ;;  %v142_v5 = vld [vmem:[#allocation2 + $0x308] sm:$0xff]  ;;  %v476_v6 = vpack.c.bf16 %v123_v61, %v119_v60 }
  0x33   :  { %465 = vmatpush1.bf16.msra.mxu1 %v464_v33  ;;  %v146_v7 = vld [vmem:[#allocation2 + $0x328] sm:$0xff]  ;;  %v478_v8 = vpack.c.bf16 %v132_v0, %v128_v63  ;;  %v127_v9 = vld [vmem:[#allocation2 + $0x290] sm:$0xff]  ;;  %v136_v11 = vld [vmem:[#allocation2 + $0x2d8] sm:$0xff]  ;;  %v420_v13 = vpack.c.bf16 %v137_v4, %v133_v3 }
  0x34   :  { %467 = vmatprep.subr.bf16.mxu1 %v466_v35  ;;  %v131_v10 = vld [vmem:[#allocation2 + $0x2b0] sm:$0xff]  ;;  %v140_v12 = vld [vmem:[#allocation2 + $0x2f8] sm:$0xff]  ;;  %v422_v14 = vpack.c.bf16 %v146_v7, %v142_v5  ;;  %v141_v15 = vld [vmem:[#allocation2 + $0x300] sm:$0xff] }
  0x35   :  { %405 = vmatpush1.bf16.msra.mxu0 %v404_v28  ;;  %v145_v16 = vld [vmem:[#allocation2 + $0x320] sm:$0xff]  ;;  %v150_v17 = vld [vmem:[#allocation2 + $0x348] sm:$0xff]  ;;  %v480_v18 = vpack.c.bf16 %v131_v10, %v127_v9  ;;  %v482_v20 = vpack.c.bf16 %v140_v12, %v136_v11  ;;  %v135_v21 = vld [vmem:[#allocation2 + $0x2d0] sm:$0xff] }
  0x36   :  { %407 = vmatprep.subr.bf16.mxu0 %v406_v29  ;;  %v154_v19 = vld [vmem:[#allocation2 + $0x368] sm:$0xff]  ;;  %v139_v22 = vld [vmem:[#allocation2 + $0x2f0] sm:$0xff]  ;;  %v144_v23 = vld [vmem:[#allocation2 + $0x318] sm:$0xff]  ;;  %v424_v25 = vpack.c.bf16 %v145_v16, %v141_v15 }
  0x37   :  { %469 = vmatpush1.bf16.msra.mxu1 %v468_v45  ;;  %v148_v24 = vld [vmem:[#allocation2 + $0x338] sm:$0xff]  ;;  %v426_v26 = vpack.c.bf16 %v154_v19, %v150_v17  ;;  %v149_v27 = vld [vmem:[#allocation2 + $0x340] sm:$0xff]  ;;  %v158_v29 = vld [vmem:[#allocation2 + $0x388] sm:$0xff]  ;;  %v484_v30 = vpack.c.bf16 %v139_v22, %v135_v21 }
  0x38   :  { %471 = vmatprep.subr.bf16.mxu1 %v470_v47  ;;  %v153_v28 = vld [vmem:[#allocation2 + $0x360] sm:$0xff]  ;;  %v162_v31 = vld [vmem:[#allocation2 + $0x3a8] sm:$0xff]  ;;  %v486_v32 = vpack.c.bf16 %v148_v24, %v144_v23  ;;  %v143_v33 = vld [vmem:[#allocation2 + $0x310] sm:$0xff] }
  0x39   :  { %409 = vmatpush1.bf16.msra.mxu0 %v408_v40  ;;  %v147_v34 = vld [vmem:[#allocation2 + $0x330] sm:$0xff]  ;;  %v152_v35 = vld [vmem:[#allocation2 + $0x358] sm:$0xff]  ;;  %v428_v37 = vpack.c.bf16 %v153_v28, %v149_v27  ;;  %v430_v38 = vpack.c.bf16 %v162_v31, %v158_v29  ;;  %v157_v39 = vld [vmem:[#allocation2 + $0x380] sm:$0xff] }
  0x3a   :  { %411 = vmatprep.subr.bf16.mxu0 %v410_v41  ;;  %v156_v36 = vld [vmem:[#allocation2 + $0x378] sm:$0xff]  ;;  %v161_v40 = vld [vmem:[#allocation2 + $0x3a0] sm:$0xff]  ;;  %v166_v41 = vld [vmem:[#allocation2 + $0x3c8] sm:$0xff]  ;;  %v488_v42 = vpack.c.bf16 %v147_v34, %v143_v33 }
  0x3b   :  { %473 = vmatpush1.bf16.msra.mxu1 %v472_v58  ;;  %v170_v43 = vld [vmem:[#allocation2 + $0x3e8] sm:$0xff]  ;;  %v490_v44 = vpack.c.bf16 %v156_v36, %v152_v35  ;;  %v151_v45 = vld [vmem:[#allocation2 + $0x350] sm:$0xff]  ;;  %v160_v47 = vld [vmem:[#allocation2 + $0x398] sm:$0xff]  ;;  %v432_v49 = vpack.c.bf16 %v161_v40, %v157_v39 }
  0x3c   :  { %475 = vmatprep.subr.bf16.mxu1 %v474_v59  ;;  %v155_v46 = vld [vmem:[#allocation2 + $0x370] sm:$0xff]  ;;  %v164_v48 = vld [vmem:[#allocation2 + $0x3b8] sm:$0xff]  ;;  %v434_v50 = vpack.c.bf16 %v170_v43, %v166_v41  ;;  %v165_v51 = vld [vmem:[#allocation2 + $0x3c0] sm:$0xff] }
  0x3d   :  { %413 = vmatpush1.bf16.msra.mxu0 %v412_v52  ;;  %v169_v52 = vld [vmem:[#allocation2 + $0x3e0] sm:$0xff]  ;;  %v492_v53 = vpack.c.bf16 %v155_v46, %v151_v45  ;;  %v159_v55 = vld [vmem:[#allocation2 + $0x390] sm:$0xff]  ;;  %v168_v57 = vld [vmem:[#allocation2 + $0x3d8] sm:$0xff] }
  0x3e   :  { %415 = vmatprep.subr.bf16.mxu0 %v414_v54  ;;  %v494_v54 = vpack.c.bf16 %v164_v48, %v160_v47  ;;  %v163_v56 = vld [vmem:[#allocation2 + $0x3b0] sm:$0xff]  ;;  %v172_v58 = vld [vmem:[#allocation2 + $0x3f8] sm:$0xff]  ;;  %v436_v59 = vpack.c.bf16 %v169_v52, %v165_v51  ;;  %v43_v0 = vld [vmem:[%s675_s0] sm:$0xff] }
  0x3f   :  { %477 = vmatpush1.bf16.msra.mxu1 %v476_v6  ;;  %v496_v60 = vpack.c.bf16 %v163_v56, %v159_v55  ;;  %v498_v61 = vpack.c.bf16 %v172_v58, %v168_v57  ;;  %v167_v62 = vld [vmem:[#allocation2 + $0x3d0] sm:$0xff]  ;;  %v39_v15 = vld [vmem:[%s676_s1] sm:$0xff] }
  0x40   :  { %479 = vmatprep.subr.bf16.mxu1 %v478_v8  ;;  %v171_v63 = vld [vmem:[#allocation2 + $0x3f0] sm:$0xff] }
  0x41   :  { %417 = vmatpush1.bf16.msra.mxu0 %v416_v1  ;;  %v500_v1 = vpack.c.bf16 %v171_v63, %v167_v62 }
  0x42   :  { %419 = vmatprep.subr.bf16.mxu0 %v418_v2 }
  0x43   :  { %481 = vmatpush1.bf16.msra.mxu1 %v480_v18 }
  0x44   :  { %483 = vmatprep.subr.bf16.mxu1 %v482_v20 }
  0x45   :  { %421 = vmatpush1.bf16.msra.mxu0 %v420_v13 }
  0x46   :  { %423 = vmatprep.subr.bf16.mxu0 %v422_v14 }
  0x47   :  { %485 = vmatpush1.bf16.msra.mxu1 %v484_v30 }
  0x48   :  { %487 = vmatprep.subr.bf16.mxu1 %v486_v32 }
  0x49   :  { %425 = vmatpush1.bf16.msra.mxu0 %v424_v25 }
  0x4a   :  { %427 = vmatprep.subr.bf16.mxu0 %v426_v26 }
  0x4b   :  { %489 = vmatpush1.bf16.msra.mxu1 %v488_v42 }
  0x4c   :  { %491 = vmatprep.subr.bf16.mxu1 %v490_v44 }
  0x4d   :  { %429 = vmatpush1.bf16.msra.mxu0 %v428_v37 }
  0x4e   :  { %431 = vmatprep.subr.bf16.mxu0 %v430_v38 }
  0x4f   :  { %493 = vmatpush1.bf16.msra.mxu1 %v492_v53 }
  0x50   :  { %495 = vmatprep.subr.bf16.mxu1 %v494_v54 }
  0x51   :  { %433 = vmatpush1.bf16.msra.mxu0 %v432_v49 }
  0x52   :  { %435 = vmatprep.subr.bf16.mxu0 %v434_v50 }
  0x53   :  { %497 = vmatpush1.bf16.msra.mxu1 %v496_v60 }
  0x54   :  { %499 = vmatprep.subr.bf16.mxu1 %v498_v61 }
  0x55   :  { %437 = vmatpush1.bf16.msra.mxu0 %v436_v59 }
  0x57   :  { %501 = vmatpush1.bf16.msra.mxu1 %v500_v1 }
  0x58   :  { %238 = vmatmul.mubr.f32.vlgmr.msra.gmra.mrb[0].mxu0 %v43_v0 }
  0x5a   :  { %309 = vmatmul.mubr.f32.vlgmr.msra.gmra.mrb[0].mxu1 %v43_v0 }
 0x12b   :  { %v239_v2 = vpop.f32.mrb[0].mxu0 }
 0x12c   :  { %v371_v3 = vmul.f32 -1.442695, %v239_v2  ;;  %v241_v4 = vpop.f32.mrb[1].mxu0 }
 0x12d   :  { %v372_v5 = vmul.f32 -1.442695, %v241_v4  ;;  %v310_v6 = vpop.f32.mrb[0].mxu1 }
 0x12e   :  { %507 = vpow2.f32 %v371_v3  ;;  %v312_v7 = vpop.f32.mrb[1].mxu1 }
 0x12f   :  { %509 = vpow2.f32 %v372_v5  ;;  %v373_v8 = vmul.f32 -1.442695, %v312_v7 }
 0x131   :  { %511 = vpow2.f32 %v373_v8 }
 0x132   :  { %513 = vtanh.f32 %v310_v6 }
 0x138   :  { %v508_v9 = vpop.eup %507 }
 0x139   :  { %v510_v10 = vpop.eup %509  ;;  %v318_v11 = vadd.f32 1.0, %v508_v9 }
 0x13a   :  { %v324_v12 = vadd.f32 1.0, %v510_v10 }
 0x13b   :  { %515 = vrcp.f32 %v318_v11  ;;  %v512_v13 = vpop.eup %511 }
 0x13c   :  { %517 = vrcp.f32 %v324_v12  ;;  %v514_v14 = vpop.eup %513  ;;  %v331_v17 = vadd.f32 1.0, %v512_v13 }
 0x13e   :  { %519 = vrcp.f32 %v331_v17 }
 0x145   :  { %v516_v16 = vpop.eup %515 }
 0x146   :  { %v518_v18 = vpop.eup %517  ;;  %v336_v19 = vmul.f32 %v516_v16, %v514_v14 }
 0x147   :  { %v335_v20 = vmul.f32 %v518_v18, %v39_v15 }
 0x149   :  { %v337_v21 = vadd.f32 %v336_v19, %v335_v20 }
 0x14b   :  { %338 = vst [vmem:[#allocation5] sm:$0xff] %v337_v21  ;;  %521 = vtanh.f32 %v337_v21 }
 0x14c   :  { %556 = shalt.err (!%p553_p12)
}
 0x14d   :  { %s557_s14 = scalar_lea.hbm %s679_s4, 128 }
 0x14e   :  { %p558_p13 = scmp.ne.s32.totalorder %s679_s4, %s557_s14  ;;  %p561_p0 = scmp.lt.u32.totalorder %s557_s14, %s679_s4 }
 0x150   :  { %p563_p1 = pnand %p561_p0, %p558_p13 }
 0x152   :  { %566 = shalt.err (!%p563_p1)
}
 0x153   :  { %351 = dma.vmem_to_hbm [thread:$0]  %s349_s11, 128, %s679_s4, [#allocation4]   ;;  %v520_v22 = vpop.eup %519 }
 0x154   :  { %s599_s21 = smov [#allocation6]  }
 0x155   :  { %s358_s22 = sshll.u32 %s599_s21, 4  ;;  %v522_v23 = vpop.eup %521  ;;  %s359_s22 = int_to_ptr.vmem [resolvable:$true] %s358_s22 }
 0x156   :  { %v340_v24 = vmul.f32 %v522_v23, %v520_v22  ;;  %s567_s23 = scalar_lea.vmem %s359_s22, 128  ;;  %p572_p3 = scmp.lt.s32.totalorder %s359_s22, %s359_s22 }
 0x157   :  { %p568_p2 = scmp.ne.s32.totalorder %s359_s22, %s567_s23  ;;  %p573_p4 = scmp.lt.s32.totalorder %s567_s23, %s567_s23 }
 0x158   :  { %341 = vst [vmem:[#allocation6] sm:$0xff] %v340_v24 }
 0x159   :  { %p574_p5 = por %p573_p4, %p572_p3 }
 0x15b   :  { %p575_p6 = pnand %p574_p5, %p568_p2 }
 0x15d   :  { %578 = shalt.err (!%p575_p6)
}
 0x15e   :  { %s579_s26 = scalar_lea.hbm %s680_s5, 128 }
 0x15f   :  { %p580_p7 = scmp.ne.s32.totalorder %s680_s5, %s579_s26  ;;  %p583_p8 = scmp.lt.u32.totalorder %s579_s26, %s680_s5 }
 0x161   :  { %p585_p9 = pnand %p583_p8, %p580_p7 }
 0x163   :  { %588 = shalt.err (!%p585_p9)
}
 0x164   :  { %361 = dma.vmem_to_hbm [thread:$0]  %s359_s22, 128, %s680_s5, [#allocation7]  }
 0x165   :  { %591 = dma.done.wait [#allocation4], 128  }
 0x166   :  { %592 = vsyncadd [#allocation4], 4294967168 }
 0x167   :  { %593 = dma.done.wait [#allocation7], 128  }
 0x168   :  { %594 = vsyncadd [#allocation7], 4294967168 }
 0x169   :  { %368 = vsyncpa [#allocation3], 1 }
 0x16a   :  { %369 = vsyncpa [#allocation4], 1 }
 0x16b   :  { %370 = vsyncpa [#allocation7], 1 }

</bundles_post_ra>
